<compile_context>
chip_gen: v7x
topology: tpu7x:2x2x1
jax: 0.10.0
libtpu: 0.0.40
codegen_flags: <defaults>
</compile_context>

<pallas_src>
import functools

import jax
import jax.numpy as jnp
import numpy as np
from jax.experimental import pallas as pl
from jax.experimental.pallas import tpu as pltpu


# ----------------------------------------------------------------------------
# Pallas kernel: fused depthwise (3x3, pad=1, groups=C) + pointwise (1x1)
# ----------------------------------------------------------------------------
def _sepconv_kernel(x_ref, wd_ref, wp_ref, o_ref, *, width):
    # x_ref : (N*C,  H*W)   batch packed on sublanes, flattened spatial on lanes
    # wd_ref: (9, N*C, H*W) depthwise taps, pre-broadcast; k = kh*3 + kw
    # wp_ref: (C, Co, H*W)  pointwise weight columns, pre-broadcast
    # o_ref : (N*Co, H*W)
    nc, hw = x_ref.shape
    c_in, c_out = wp_ref.shape[0], wp_ref.shape[1]
    num_b = nc // c_in

    x = x_ref[...].astype(jnp.float32)                      # (N*C, HW) dense load
    zero = jnp.zeros_like(x)

    # padding=1 edge masks, built once on the packed tile (NaN-safe via where).
    lane = jax.lax.broadcasted_iota(jnp.int32, (nc, hw), 1)
    col = lane % width
    has_left = col != 0                     # a (w-1) neighbour exists
    has_right = col != (width - 1)          # a (w+1) neighbour exists
    has_above = lane >= width               # a (h-1) neighbour exists
    has_below = lane < (hw - width)         # a (h+1) neighbour exists

    def from_offset(v, off):
        # out[.., m] = v[.., (m + off) % hw]; wrapped lanes are masked by caller.
        return pltpu.roll(v, shift=(-off) % hw, axis=1)

    # Column (dw) shifts first, pre-masked; reused by all three row (dh) shifts.
    x_dw = (
        jnp.where(has_left, from_offset(x, -1), zero),      # dw = -1
        x,                                                  # dw =  0
        jnp.where(has_right, from_offset(x, +1), zero),     # dw = +1
    )

    # Depthwise 3x3: nine full-lane-width VPU FMAs; each shift is one XLU roll.
    acc = zero
    for i in range(3):                                      # dh = i - 1
        for j in range(3):                                  # dw = j - 1
            xc = x_dw[j]
            if i == 0:                                      # needs row h-1
                win = jnp.where(has_above, from_offset(xc, -width), zero)
            elif i == 2:                                    # needs row h+1
                win = jnp.where(has_below, from_offset(xc, +width), zero)
            else:
                win = xc
            acc = acc + win * wd_ref[i * 3 + j].astype(jnp.float32)

    # Pointwise 1x1 as exact-f32 VPU broadcast-FMAs (C=4 -> Co=8 is far too
    # small to pay for MXU push/pop latency, and keeps bit-exact f32).
    for b in range(num_b):
        out_b = jnp.zeros((c_out, hw), jnp.float32)
        for ci in range(c_in):
            r = b * c_in + ci
            out_b = out_b + wp_ref[ci].astype(jnp.float32) * acc[r:r + 1, :]
        o_ref[b * c_out:(b + 1) * c_out, :] = out_b.astype(o_ref.dtype)


def separable_conv2d_nchw(x_nchw, w_depthwise, w_pointwise):
    """Forward pass of SeparableConv2d.

    x_nchw      : (N, C, H, W)     -- PyTorch layout input
    w_depthwise : (C, 1, 3, 3)     -- depthwise conv weight (groups=C)
    w_pointwise : (Co, C, 1, 1)    -- pointwise conv weight
    returns     : (N, Co, H, W)
    """
    n, c, h, w = x_nchw.shape
    co = w_pointwise.shape[0]
    kh, kw = w_depthwise.shape[2], w_depthwise.shape[3]
    # The module hard-codes padding=1, so only 3x3 depthwise filters are valid.
    assert kh == 3 and kw == 3, "SeparableConv2d kernel supports 3x3 depthwise only"
    assert w_depthwise.shape[0] == c and w_depthwise.shape[1] == 1
    assert w_pointwise.shape[1] == c

    hw = h * w
    nc = n * c
    nco = n * co
    dt = x_nchw.dtype

    # Free, layout-preserving reshape: batch packed onto the sublane axis,
    # flattened spatial (H*W) on the 128-lane axis.  No transposes, no pad.
    x_packed = x_nchw.reshape(nc, hw)

    # Pre-broadcast the tiny weights (a few tens of KiB) so the kernel body is
    # pure full-width vreg FMAs with zero in-kernel lane extraction/broadcast.
    wd = w_depthwise.reshape(c, kh * kw)                        # (C, 9)
    wd_packed = jnp.tile(wd, (n, 1))                            # (N*C, 9)
    wd_exp = jnp.broadcast_to(
        jnp.transpose(wd_packed)[:, :, None], (kh * kw, nc, hw)).astype(dt)

    wp = w_pointwise.reshape(co, c)                             # (Co, C)
    wp_exp = jnp.broadcast_to(
        jnp.transpose(wp)[:, :, None], (c, co, hw)).astype(dt)  # (C, Co, HW)

    out_packed = pl.pallas_call(
        functools.partial(_sepconv_kernel, width=w),
        out_shape=jax.ShapeDtypeStruct((nco, hw), dt),
        in_specs=[
            pl.BlockSpec(memory_space=pltpu.MemorySpace.VMEM),
            pl.BlockSpec(memory_space=pltpu.MemorySpace.VMEM),
            pl.BlockSpec(memory_space=pltpu.MemorySpace.VMEM),
        ],
        out_specs=pl.BlockSpec(memory_space=pltpu.MemorySpace.VMEM),
    )(x_packed, wd_exp, wp_exp)

    return out_packed.reshape(n, co, h, w)


# ----------------------------------------------------------------------------
# Parameter setup (glue): deterministic weights + spectral normalization
# ----------------------------------------------------------------------------
def _spectral_normalize(w, key, n_iter=30, eps=1e-12):
    """Replicates torch.nn.utils.spectral_norm weight scaling: W / sigma(W)."""
    w_mat = w.reshape(w.shape[0], -1)
    u = jax.random.normal(key, (w_mat.shape[0],), dtype=w.dtype)
    u = u / (jnp.linalg.norm(u) + eps)
    v = None
    for _ in range(n_iter):
        v = w_mat.T @ u
        v = v / (jnp.linalg.norm(v) + eps)
        u = w_mat @ v
        u = u / (jnp.linalg.norm(u) + eps)
    sigma = u @ (w_mat @ v)
    return w / sigma


def _reference_sepconv(x_nchw, w_dw, w_pw):
    """Pure-JAX reference using lax.conv_general_dilated (for verification)."""
    c = x_nchw.shape[1]
    dw_out = jax.lax.conv_general_dilated(
        x_nchw, w_dw, window_strides=(1, 1), padding=((1, 1), (1, 1)),
        feature_group_count=c,
        dimension_numbers=("NCHW", "OIHW", "NCHW"),
        precision=jax.lax.Precision.HIGHEST)
    return jax.lax.conv_general_dilated(
        dw_out, w_pw, window_strides=(1, 1), padding=((0, 0), (0, 0)),
        dimension_numbers=("NCHW", "OIHW", "NCHW"),
        precision=jax.lax.Precision.HIGHEST)


if __name__ == "__main__":
    # Small shapes consistent with the module: N=2, C_in=4, C_out=8, 16x16, k=3.
    N, C_IN, C_OUT, H, W, K = 2, 4, 8, 16, 16, 3

    key = jax.random.PRNGKey(0)
    k_x, k_wd, k_wp, k_u1, k_u2 = jax.random.split(key, 5)

    x = jax.random.normal(k_x, (N, C_IN, H, W), dtype=jnp.float32)

    # Deterministic raw weights (same shapes as the PyTorch module's params).
    w_dw_raw = jax.random.normal(k_wd, (C_IN, 1, K, K), dtype=jnp.float32) * 0.2
    w_pw_raw = jax.random.normal(k_wp, (C_OUT, C_IN, 1, 1), dtype=jnp.float32) * 0.2

    # Spectral normalization applied at weight-setup time (glue).
    w_dw = _spectral_normalize(w_dw_raw, k_u1)
    w_pw = _spectral_normalize(w_pw_raw, k_u2)

    out = separable_conv2d_nchw(x, w_dw, w_pw)
    out = jax.block_until_ready(out)

    # Silent correctness check against a pure-JAX reference.
    ref = jax.block_until_ready(_reference_sepconv(x, w_dw, w_pw))
    assert out.shape == (N, C_OUT, H, W)
    np.testing.assert_allclose(np.asarray(out), np.asarray(ref),
                               rtol=1e-4, atol=1e-4)

    print("KERNEL_OK")
</pallas_src>

<mosaic_0001>
module attributes {stable_mosaic.version = 11 : i64} {
  func.func @_sepconv_kernel(%arg0: memref<8x256xf32, #tpu.memory_space<vmem>>, %arg1: memref<9x8x256xf32, #tpu.memory_space<vmem>>, %arg2: memref<4x8x256xf32, #tpu.memory_space<vmem>>, %arg3: memref<16x256xf32, #tpu.memory_space<vmem>>) attributes {dimension_semantics = [], scalar_prefetch = 0 : i64, scratch_operands = 0 : i64, tpu.core_type = #tpu.core_type<tc>} {
    %c0 = arith.constant 0 : index
    %c0_0 = arith.constant 0 : index
    %0 = vector.load %arg0[%c0, %c0_0] : memref<8x256xf32, #tpu.memory_space<vmem>>, vector<8x256xf32>
    %cst = arith.constant 0.000000e+00 : f32
    %1 = vector.broadcast %cst : f32 to vector<8x256xf32>
    %2 = tpu.iota {dimensions = array<i32: 1>} : vector<8x256xi32>
    %c16_i32 = arith.constant 16 : i32
    %c0_i32 = arith.constant 0 : i32
    %3 = arith.cmpi eq, %c16_i32, %c0_i32 : i32
    %c1_i32 = arith.constant 1 : i32
    %4 = arith.select %3, %c1_i32, %c16_i32 : i32
    %5 = vector.broadcast %4 : i32 to vector<8x256xi32>
    %6 = arith.remsi %2, %5 : vector<8x256xi32>
    %c0_i32_1 = arith.constant 0 : i32
    %7 = vector.broadcast %c0_i32_1 : i32 to vector<8x256xi32>
    %8 = arith.cmpi ne, %6, %7 : vector<8x256xi32>
    %c0_i32_2 = arith.constant 0 : i32
    %9 = vector.broadcast %c0_i32_2 : i32 to vector<8x256xi32>
    %10 = arith.cmpi slt, %6, %9 : vector<8x256xi32>
    %c0_i32_3 = arith.constant 0 : i32
    %11 = arith.cmpi slt, %4, %c0_i32_3 : i32
    %12 = vector.broadcast %11 : i1 to vector<8x256xi1>
    %13 = vector.broadcast %12 : vector<8x256xi1> to vector<8x256xi1>
    %14 = arith.xori %10, %13 : vector<8x256xi1>
    %15 = arith.andi %14, %8 : vector<8x256xi1>
    %16 = vector.broadcast %4 : i32 to vector<8x256xi32>
    %17 = arith.addi %6, %16 : vector<8x256xi32>
    %18 = arith.select %15, %17, %6 : vector<8x256xi1>, vector<8x256xi32>
    %c0_i32_4 = arith.constant 0 : i32
    %19 = vector.broadcast %c0_i32_4 : i32 to vector<8x256xi32>
    %20 = arith.cmpi ne, %18, %19 : vector<8x256xi32>
    %c15_i32 = arith.constant 15 : i32
    %21 = vector.broadcast %c15_i32 : i32 to vector<8x256xi32>
    %22 = arith.cmpi ne, %18, %21 : vector<8x256xi32>
    %c16_i32_5 = arith.constant 16 : i32
    %23 = vector.broadcast %c16_i32_5 : i32 to vector<8x256xi32>
    %24 = arith.cmpi sge, %2, %23 : vector<8x256xi32>
    %c240_i32 = arith.constant 240 : i32
    %25 = vector.broadcast %c240_i32 : i32 to vector<8x256xi32>
    %26 = arith.cmpi slt, %2, %25 : vector<8x256xi32>
    %c1_i32_6 = arith.constant 1 : i32
    %27 = tpu.dynamic_rotate %0 by %c1_i32_6 dim 1 : vector<8x256xf32>, i32 -> vector<8x256xf32>
    %28 = arith.select %20, %27, %1 : vector<8x256xi1>, vector<8x256xf32>
    %c255_i32 = arith.constant 255 : i32
    %29 = tpu.dynamic_rotate %0 by %c255_i32 dim 1 : vector<8x256xf32>, i32 -> vector<8x256xf32>
    %30 = arith.select %22, %29, %1 : vector<8x256xi1>, vector<8x256xf32>
    %c16_i32_7 = arith.constant 16 : i32
    %31 = tpu.dynamic_rotate %28 by %c16_i32_7 dim 1 : vector<8x256xf32>, i32 -> vector<8x256xf32>
    %32 = arith.select %24, %31, %1 : vector<8x256xi1>, vector<8x256xf32>
    %c0_8 = arith.constant 0 : index
    %c0_9 = arith.constant 0 : index
    %c0_10 = arith.constant 0 : index
    %33 = vector.load %arg1[%c0_8, %c0_9, %c0_10] : memref<9x8x256xf32, #tpu.memory_space<vmem>>, vector<1x8x256xf32>
    %34 = vector.shape_cast %33 : vector<1x8x256xf32> to vector<8x256xf32>
    %35 = arith.mulf %32, %34 : vector<8x256xf32>
    %36 = arith.addf %1, %35 : vector<8x256xf32>
    %c16_i32_11 = arith.constant 16 : i32
    %37 = tpu.dynamic_rotate %0 by %c16_i32_11 dim 1 : vector<8x256xf32>, i32 -> vector<8x256xf32>
    %38 = arith.select %24, %37, %1 : vector<8x256xi1>, vector<8x256xf32>
    %c1 = arith.constant 1 : index
    %c0_12 = arith.constant 0 : index
    %c0_13 = arith.constant 0 : index
    %39 = vector.load %arg1[%c1, %c0_12, %c0_13] : memref<9x8x256xf32, #tpu.memory_space<vmem>>, vector<1x8x256xf32>
    %40 = vector.shape_cast %39 : vector<1x8x256xf32> to vector<8x256xf32>
    %41 = arith.mulf %38, %40 : vector<8x256xf32>
    %42 = arith.addf %36, %41 : vector<8x256xf32>
    %c16_i32_14 = arith.constant 16 : i32
    %43 = tpu.dynamic_rotate %30 by %c16_i32_14 dim 1 : vector<8x256xf32>, i32 -> vector<8x256xf32>
    %44 = arith.select %24, %43, %1 : vector<8x256xi1>, vector<8x256xf32>
    %c2 = arith.constant 2 : index
    %c0_15 = arith.constant 0 : index
    %c0_16 = arith.constant 0 : index
    %45 = vector.load %arg1[%c2, %c0_15, %c0_16] : memref<9x8x256xf32, #tpu.memory_space<vmem>>, vector<1x8x256xf32>
    %46 = vector.shape_cast %45 : vector<1x8x256xf32> to vector<8x256xf32>
    %47 = arith.mulf %44, %46 : vector<8x256xf32>
    %48 = arith.addf %42, %47 : vector<8x256xf32>
    %c3 = arith.constant 3 : index
    %c0_17 = arith.constant 0 : index
    %c0_18 = arith.constant 0 : index
    %49 = vector.load %arg1[%c3, %c0_17, %c0_18] : memref<9x8x256xf32, #tpu.memory_space<vmem>>, vector<1x8x256xf32>
    %50 = vector.shape_cast %49 : vector<1x8x256xf32> to vector<8x256xf32>
    %51 = arith.mulf %28, %50 : vector<8x256xf32>
    %52 = arith.addf %48, %51 : vector<8x256xf32>
    %c4 = arith.constant 4 : index
    %c0_19 = arith.constant 0 : index
    %c0_20 = arith.constant 0 : index
    %53 = vector.load %arg1[%c4, %c0_19, %c0_20] : memref<9x8x256xf32, #tpu.memory_space<vmem>>, vector<1x8x256xf32>
    %54 = vector.shape_cast %53 : vector<1x8x256xf32> to vector<8x256xf32>
    %55 = arith.mulf %0, %54 : vector<8x256xf32>
    %56 = arith.addf %52, %55 : vector<8x256xf32>
    %c5 = arith.constant 5 : index
    %c0_21 = arith.constant 0 : index
    %c0_22 = arith.constant 0 : index
    %57 = vector.load %arg1[%c5, %c0_21, %c0_22] : memref<9x8x256xf32, #tpu.memory_space<vmem>>, vector<1x8x256xf32>
    %58 = vector.shape_cast %57 : vector<1x8x256xf32> to vector<8x256xf32>
    %59 = arith.mulf %30, %58 : vector<8x256xf32>
    %60 = arith.addf %56, %59 : vector<8x256xf32>
    %c240_i32_23 = arith.constant 240 : i32
    %61 = tpu.dynamic_rotate %28 by %c240_i32_23 dim 1 : vector<8x256xf32>, i32 -> vector<8x256xf32>
    %62 = arith.select %26, %61, %1 : vector<8x256xi1>, vector<8x256xf32>
    %c6 = arith.constant 6 : index
    %c0_24 = arith.constant 0 : index
    %c0_25 = arith.constant 0 : index
    %63 = vector.load %arg1[%c6, %c0_24, %c0_25] : memref<9x8x256xf32, #tpu.memory_space<vmem>>, vector<1x8x256xf32>
    %64 = vector.shape_cast %63 : vector<1x8x256xf32> to vector<8x256xf32>
    %65 = arith.mulf %62, %64 : vector<8x256xf32>
    %66 = arith.addf %60, %65 : vector<8x256xf32>
    %c240_i32_26 = arith.constant 240 : i32
    %67 = tpu.dynamic_rotate %0 by %c240_i32_26 dim 1 : vector<8x256xf32>, i32 -> vector<8x256xf32>
    %68 = arith.select %26, %67, %1 : vector<8x256xi1>, vector<8x256xf32>
    %c7 = arith.constant 7 : index
    %c0_27 = arith.constant 0 : index
    %c0_28 = arith.constant 0 : index
    %69 = vector.load %arg1[%c7, %c0_27, %c0_28] : memref<9x8x256xf32, #tpu.memory_space<vmem>>, vector<1x8x256xf32>
    %70 = vector.shape_cast %69 : vector<1x8x256xf32> to vector<8x256xf32>
    %71 = arith.mulf %68, %70 : vector<8x256xf32>
    %72 = arith.addf %66, %71 : vector<8x256xf32>
    %c240_i32_29 = arith.constant 240 : i32
    %73 = tpu.dynamic_rotate %30 by %c240_i32_29 dim 1 : vector<8x256xf32>, i32 -> vector<8x256xf32>
    %74 = arith.select %26, %73, %1 : vector<8x256xi1>, vector<8x256xf32>
    %c8 = arith.constant 8 : index
    %c0_30 = arith.constant 0 : index
    %c0_31 = arith.constant 0 : index
    %75 = vector.load %arg1[%c8, %c0_30, %c0_31] : memref<9x8x256xf32, #tpu.memory_space<vmem>>, vector<1x8x256xf32>
    %76 = vector.shape_cast %75 : vector<1x8x256xf32> to vector<8x256xf32>
    %77 = arith.mulf %74, %76 : vector<8x256xf32>
    %78 = arith.addf %72, %77 : vector<8x256xf32>
    %cst_32 = arith.constant 0.000000e+00 : f32
    %79 = vector.broadcast %cst_32 : f32 to vector<8x256xf32>
    %c0_33 = arith.constant 0 : index
    %c0_34 = arith.constant 0 : index
    %c0_35 = arith.constant 0 : index
    %80 = vector.load %arg2[%c0_33, %c0_34, %c0_35] : memref<4x8x256xf32, #tpu.memory_space<vmem>>, vector<1x8x256xf32>
    %81 = vector.shape_cast %80 : vector<1x8x256xf32> to vector<8x256xf32>
    %82 = vector.extract_strided_slice %78 {offsets = [0, 0], sizes = [1, 256], strides = [1, 1]} : vector<8x256xf32> to vector<1x256xf32>
    %83 = vector.broadcast %82 : vector<1x256xf32> to vector<8x256xf32>
    %84 = arith.mulf %81, %83 : vector<8x256xf32>
    %85 = arith.addf %79, %84 : vector<8x256xf32>
    %c1_36 = arith.constant 1 : index
    %c0_37 = arith.constant 0 : index
    %c0_38 = arith.constant 0 : index
    %86 = vector.load %arg2[%c1_36, %c0_37, %c0_38] : memref<4x8x256xf32, #tpu.memory_space<vmem>>, vector<1x8x256xf32>
    %87 = vector.shape_cast %86 : vector<1x8x256xf32> to vector<8x256xf32>
    %88 = vector.extract_strided_slice %78 {offsets = [1, 0], sizes = [1, 256], strides = [1, 1]} : vector<8x256xf32> to vector<1x256xf32>
    %89 = vector.broadcast %88 : vector<1x256xf32> to vector<8x256xf32>
    %90 = arith.mulf %87, %89 : vector<8x256xf32>
    %91 = arith.addf %85, %90 : vector<8x256xf32>
    %c2_39 = arith.constant 2 : index
    %c0_40 = arith.constant 0 : index
    %c0_41 = arith.constant 0 : index
    %92 = vector.load %arg2[%c2_39, %c0_40, %c0_41] : memref<4x8x256xf32, #tpu.memory_space<vmem>>, vector<1x8x256xf32>
    %93 = vector.shape_cast %92 : vector<1x8x256xf32> to vector<8x256xf32>
    %94 = vector.extract_strided_slice %78 {offsets = [2, 0], sizes = [1, 256], strides = [1, 1]} : vector<8x256xf32> to vector<1x256xf32>
    %95 = vector.broadcast %94 : vector<1x256xf32> to vector<8x256xf32>
    %96 = arith.mulf %93, %95 : vector<8x256xf32>
    %97 = arith.addf %91, %96 : vector<8x256xf32>
    %c3_42 = arith.constant 3 : index
    %c0_43 = arith.constant 0 : index
    %c0_44 = arith.constant 0 : index
    %98 = vector.load %arg2[%c3_42, %c0_43, %c0_44] : memref<4x8x256xf32, #tpu.memory_space<vmem>>, vector<1x8x256xf32>
    %99 = vector.shape_cast %98 : vector<1x8x256xf32> to vector<8x256xf32>
    %100 = vector.extract_strided_slice %78 {offsets = [3, 0], sizes = [1, 256], strides = [1, 1]} : vector<8x256xf32> to vector<1x256xf32>
    %101 = vector.broadcast %100 : vector<1x256xf32> to vector<8x256xf32>
    %102 = arith.mulf %99, %101 : vector<8x256xf32>
    %103 = arith.addf %97, %102 : vector<8x256xf32>
    %c0_45 = arith.constant 0 : index
    %c0_46 = arith.constant 0 : index
    %104 = vector.load %arg3[%c0_45, %c0_46] : memref<16x256xf32, #tpu.memory_space<vmem>>, vector<8x256xf32>
    tpu.vector_store %arg3[%c0_45, %c0_46], %103 {strides = array<i32>} : memref<16x256xf32, #tpu.memory_space<vmem>>, vector<8x256xf32>,
    %cst_47 = arith.constant 0.000000e+00 : f32
    %105 = vector.broadcast %cst_47 : f32 to vector<8x256xf32>
    %c0_48 = arith.constant 0 : index
    %c0_49 = arith.constant 0 : index
    %c0_50 = arith.constant 0 : index
    %106 = vector.load %arg2[%c0_48, %c0_49, %c0_50] : memref<4x8x256xf32, #tpu.memory_space<vmem>>, vector<1x8x256xf32>
    %107 = vector.shape_cast %106 : vector<1x8x256xf32> to vector<8x256xf32>
    %108 = vector.extract_strided_slice %78 {offsets = [4, 0], sizes = [1, 256], strides = [1, 1]} : vector<8x256xf32> to vector<1x256xf32>
    %109 = vector.broadcast %108 : vector<1x256xf32> to vector<8x256xf32>
    %110 = arith.mulf %107, %109 : vector<8x256xf32>
    %111 = arith.addf %105, %110 : vector<8x256xf32>
    %c1_51 = arith.constant 1 : index
    %c0_52 = arith.constant 0 : index
    %c0_53 = arith.constant 0 : index
    %112 = vector.load %arg2[%c1_51, %c0_52, %c0_53] : memref<4x8x256xf32, #tpu.memory_space<vmem>>, vector<1x8x256xf32>
    %113 = vector.shape_cast %112 : vector<1x8x256xf32> to vector<8x256xf32>
    %114 = vector.extract_strided_slice %78 {offsets = [5, 0], sizes = [1, 256], strides = [1, 1]} : vector<8x256xf32> to vector<1x256xf32>
    %115 = vector.broadcast %114 : vector<1x256xf32> to vector<8x256xf32>
    %116 = arith.mulf %113, %115 : vector<8x256xf32>
    %117 = arith.addf %111, %116 : vector<8x256xf32>
    %c2_54 = arith.constant 2 : index
    %c0_55 = arith.constant 0 : index
    %c0_56 = arith.constant 0 : index
    %118 = vector.load %arg2[%c2_54, %c0_55, %c0_56] : memref<4x8x256xf32, #tpu.memory_space<vmem>>, vector<1x8x256xf32>
    %119 = vector.shape_cast %118 : vector<1x8x256xf32> to vector<8x256xf32>
    %120 = vector.extract_strided_slice %78 {offsets = [6, 0], sizes = [1, 256], strides = [1, 1]} : vector<8x256xf32> to vector<1x256xf32>
    %121 = vector.broadcast %120 : vector<1x256xf32> to vector<8x256xf32>
    %122 = arith.mulf %119, %121 : vector<8x256xf32>
    %123 = arith.addf %117, %122 : vector<8x256xf32>
    %c3_57 = arith.constant 3 : index
    %c0_58 = arith.constant 0 : index
    %c0_59 = arith.constant 0 : index
    %124 = vector.load %arg2[%c3_57, %c0_58, %c0_59] : memref<4x8x256xf32, #tpu.memory_space<vmem>>, vector<1x8x256xf32>
    %125 = vector.shape_cast %124 : vector<1x8x256xf32> to vector<8x256xf32>
    %126 = vector.extract_strided_slice %78 {offsets = [7, 0], sizes = [1, 256], strides = [1, 1]} : vector<8x256xf32> to vector<1x256xf32>
    %127 = vector.broadcast %126 : vector<1x256xf32> to vector<8x256xf32>
    %128 = arith.mulf %125, %127 : vector<8x256xf32>
    %129 = arith.addf %123, %128 : vector<8x256xf32>
    %c8_60 = arith.constant 8 : index
    %c0_61 = arith.constant 0 : index
    %130 = vector.load %arg3[%c8_60, %c0_61] : memref<16x256xf32, #tpu.memory_space<vmem>>, vector<8x256xf32>
    tpu.vector_store %arg3[%c8_60, %c0_61], %129 {strides = array<i32>} : memref<16x256xf32, #tpu.memory_space<vmem>>, vector<8x256xf32>,
    return
  }
}

</mosaic_0001>

<bundles_post_ra>
// kernel: tpu_custom_call.1
= control target key start
LH: loop header
LB: loop body
LE: loop exit
PB: predicated region body
PF: predicated region fallthrough
CT: control target
= control target key end

     0   :  { %8 = vsyncpa [#allocation3], 0  ;;  %s628_s0 = inlined_call_operand.hbm [shape: f32[8,256], index: 0, kind: input, shape index: {}]   ;;  %s629_s1 = inlined_call_operand.hbm [shape: f32[9,8,256], index: 1, kind: input, shape index: {}]   ;;  %s630_s2 = inlined_call_operand.hbm [shape: f32[4,8,256], index: 2, kind: input, shape index: {}]   ;;  %s631_s3 = inlined_call_operand.hbm [shape: f32[16,256], index: 3, kind: output, shape index: {}]  }
   0x1   :  { %9 = vsyncpa [#allocation6], 0 }
   0x2   :  { %10 = vsyncpa [#allocation4], 0  ;;  %s461_s12 = smov [#allocation5]   ;;  %s367_s16 = scalar_lea.hbm %s629_s1, 2304 }
   0x3   :  { %s26_s13 = sshll.u32 %s461_s12, 4  ;;  %p368_p0 = scmp.ne.s32.totalorder %s629_s1, %s367_s16  ;;  %s27_s13 = int_to_ptr.vmem [resolvable:$true] %s26_s13 }
   0x4   :  { %p371_p1 = scmp.lt.u32.totalorder %s367_s16, %s629_s1 }
   0x6   :  { %p373_p2 = pnand %p371_p1, %p368_p0 }
   0x8   :  { %376 = shalt.err (!%p373_p2)
}
   0x9   :  { %s377_s21 = scalar_lea.vmem %s27_s13, 2304  ;;  %p382_p4 = scmp.lt.s32.totalorder %s27_s13, %s27_s13 }
   0xa   :  { %p378_p3 = scmp.ne.s32.totalorder %s27_s13, %s377_s21  ;;  %p383_p5 = scmp.lt.s32.totalorder %s377_s21, %s377_s21 }
   0xc   :  { %p384_p6 = por %p383_p5, %p382_p4 }
   0xe   :  { %p385_p7 = pnand %p384_p6, %p378_p3 }
  0x10   :  { %388 = shalt.err (!%p385_p7)
}
  0x11   :  { %s462_s22 = smov 256   ;;  %s463_s23 = smov 16  }
  0x12   :  { %32 = dma.hbm_to_vmem [thread:$0]  %s629_s1, 2304, %s27_s13, [#allocation6], %s462_s22, %s462_s22, %s463_s23  }
  0x13   :  { %s464_s26 = smov [#allocation2]   ;;  %s465_s28 = smov [#allocation7]  }
  0x14   :  { %s17_s27 = sshll.u32 %s464_s26, 4  ;;  %s38_s29 = sshll.u32 %s465_s28, 4  ;;  %s18_s27 = int_to_ptr.vmem [resolvable:$true] %s17_s27  ;;  %s39_s29 = int_to_ptr.vmem [resolvable:$true] %s38_s29 }
  0x15   :  { %s389_s5 = scalar_lea.hbm %s628_s0, 256 }
  0x16   :  { %p390_p8 = scmp.ne.s32.totalorder %s628_s0, %s389_s5  ;;  %p393_p9 = scmp.lt.u32.totalorder %s389_s5, %s628_s0 }
  0x18   :  { %p395_p10 = pnand %p393_p9, %p390_p8 }
  0x1a   :  { %398 = shalt.err (!%p395_p10)
}
  0x1b   :  { %s399_s1 = scalar_lea.vmem %s18_s27, 256  ;;  %p404_p12 = scmp.lt.s32.totalorder %s18_s27, %s18_s27 }
  0x1c   :  { %p400_p11 = scmp.ne.s32.totalorder %s18_s27, %s399_s1  ;;  %p405_p13 = scmp.lt.s32.totalorder %s399_s1, %s399_s1 }
  0x1e   :  { %p406_p0 = por %p405_p13, %p404_p12 }
  0x20   :  { %p407_p1 = pnand %p406_p0, %p400_p11 }
  0x22   :  { %410 = shalt.err (!%p407_p1)
}
  0x23   :  { %20 = dma.hbm_to_vmem [thread:$0]  %s628_s0, 256, %s18_s27, [#allocation3]  }
  0x24   :  { %s411_s14 = scalar_lea.hbm %s630_s2, 1024 }
  0x25   :  { %p412_p2 = scmp.ne.s32.totalorder %s630_s2, %s411_s14  ;;  %p415_p3 = scmp.lt.u32.totalorder %s411_s14, %s630_s2 }
  0x27   :  { %p417_p4 = pnand %p415_p3, %p412_p2 }
  0x29   :  { %420 = shalt.err (!%p417_p4)
}
  0x2a   :  { %s421_s19 = scalar_lea.vmem %s39_s29, 1024  ;;  %p426_p6 = scmp.lt.s32.totalorder %s39_s29, %s39_s29 }
  0x2b   :  { %p422_p5 = scmp.ne.s32.totalorder %s39_s29, %s421_s19  ;;  %p427_p7 = scmp.lt.s32.totalorder %s421_s19, %s421_s19 }
  0x2d   :  { %p428_p8 = por %p427_p7, %p426_p6 }
  0x2f   :  { %p429_p9 = pnand %p428_p8, %p422_p5 }
  0x31   :  { %432 = shalt.err (!%p429_p9)
}
  0x32   :  { %44 = dma.hbm_to_vmem [thread:$0]  %s630_s2, 1024, %s39_s29, [#allocation6], %s462_s22, %s462_s22, %s463_s23  }
  0x33   :  { %455 = dma.done.wait [#allocation3], 256  }
  0x34   :  { %456 = vsyncadd [#allocation3], 4294967040 }
  0x35   :  { %457 = dma.done.wait [#allocation6], 3328  }
  0x36   :  { %458 = vsyncadd [#allocation6], 4294963968  ;;  %v532_v0 = vld [vmem:[#allocation2] sm:$0xff]  ;;  %s466_s21 = smov 127   ;;  %s467_s24 = smov 1   ;;  %v536_v1 = vld [vmem:[#allocation2 + $0x8] sm:$0xff]  ;;  %v56_v2 = vlaneseq }
  0x37   :  { %100 = vrot.lane.b32.xlu1 %v532_v0, %s466_s21  ;;  %91 = vrot.lane.b32.xlu0 %v532_v0, %s467_s24  ;;  %s468_s2 = smov 112   ;;  %v119_v22 = vld [vmem:[#allocation5 + $0x8] sm:$0xff]  ;;  %v118_v24 = vld [vmem:[#allocation5] sm:$0xff]  ;;  %v134_v26 = vld [vmem:[#allocation5 + $0x18] sm:$0xff]  ;;  %s469_s25 = smov [#allocation8]  }
  0x38   :  { %v545_v3 = vand.u32 127, %v56_v2  ;;  %v133_v30 = vld [vmem:[#allocation5 + $0x10] sm:$0xff]  ;;  %v149_v35 = vld [vmem:[#allocation5 + $0x28] sm:$0xff]  ;;  %v148_v38 = vld [vmem:[#allocation5 + $0x20] sm:$0xff]  ;;  %s345_s26 = sshll.u32 %s469_s25, 4  ;;  %s346_s26 = int_to_ptr.vmem [resolvable:$true] %s345_s26 }
  0x39   :  { %v156_v40 = vld [vmem:[#allocation5 + $0x38] sm:$0xff]  ;;  %v163_v42 = vld [vmem:[#allocation5 + $0x48] sm:$0xff]  ;;  %v155_v45 = vld [vmem:[#allocation5 + $0x30] sm:$0xff]  ;;  %s433_s27 = scalar_lea.vmem %s346_s26, 512  ;;  %p438_p11 = scmp.lt.s32.totalorder %s346_s26, %s346_s26 }
  0x3a   :  { %v548_v4 = vadd.s32 128, %v545_v3  ;;  %v63_v5 = vand.u32 15, %v545_v3  ;;  %vm95_vm0 = vcmp.lt.s32.totalorder %v545_v3, 1  ;;  %vm104_vm3 = vcmp.lt.s32.totalorder %v545_v3, 127  ;;  %v162_v49 = vld [vmem:[#allocation5 + $0x40] sm:$0xff]  ;;  %v169_v58 = vld [vmem:[#allocation5 + $0x50] sm:$0xff]  ;;  %p434_p10 = scmp.ne.s32.totalorder %s346_s26, %s433_s27  ;;  %p439_p12 = scmp.lt.s32.totalorder %s433_s27, %s433_s27 }
  0x3b   :  { %102 = vrot.lane.b32.xlu1 %v536_v1, %s466_s21  ;;  %93 = vrot.lane.b32.xlu0 %v536_v1, %s467_s24  ;;  %vm113_vm6 = vcmp.lt.s32.totalorder %v545_v3, 16  ;;  %vm87_vm7 = vcmp.ge.s32.totalorder %v545_v3, 16  ;;  %vm179_vm8 = vcmp.lt.s32.totalorder %v545_v3, 112  ;;  %v165_v53 = vmul.f32 %v163_v42, %v536_v1  ;;  %v170_v59 = vld [vmem:[#allocation5 + $0x58] sm:$0xff] }
  0x3c   :  { %v70_v6 = vand.u32 15, %v548_v4  ;;  %vm83_vm1 = vcmp.ne.s32.totalorder %v63_v5, 0  ;;  %vm85_vm4 = vcmp.ne.s32.totalorder %v63_v5, 15  ;;  %v164_v61 = vmul.f32 %v162_v49, %v532_v0  ;;  %v222_v3 = vld [vmem:[#allocation7 + $0x8] sm:$0xff]  ;;  %p440_p13 = por %p439_p12, %p438_p11 }
  0x3d   :  { %vm90_vm9 = vcmp.lt.s32.totalorder %v548_v4, 240  ;;  %v236_v4 = vld [vmem:[#allocation7 + $0x10] sm:$0xff] }
  0x3e   :  { %vm84_vm2 = vcmp.ne.s32.totalorder %v70_v6, 0  ;;  %vm86_vm5 = vcmp.ne.s32.totalorder %v70_v6, 15  ;;  %v185_v6 = vld [vmem:[#allocation5 + $0x60] sm:$0xff]  ;;  %p441_p0 = pnand %p440_p13, %p434_p10 }
  0x3f   :  { %126 = vrot.lane.b32.xlu1 %v536_v1, %s463_s23  ;;  %124 = vrot.lane.b32.xlu0 %v532_v0, %s463_s23 }
  0xa9   :  { %v101_v7 = vpop.permute.xlu1 %100  ;;  %v92_v8 = vpop.permute.xlu0 %91 }
  0xad   :  { %v103_v9 = vpop.permute.xlu1 %102  ;;  %v94_v10 = vpop.permute.xlu0 %93 }
  0xae   :  { %v96_v11 = vsel %vm95_vm0, %v92_v8, %v94_v10  ;;  %v97_v12 = vsel %vm95_vm0, %v94_v10, %v92_v8  ;;  %v105_v15 = vsel %vm104_vm3, %v101_v7, %v103_v9  ;;  %v106_v16 = vsel %vm104_vm3, %v103_v9, %v101_v7 }
  0xaf   :  { %v98_v13 = vsel %vm83_vm1, %v97_v12, 0.0  ;;  %v99_v14 = vsel %vm84_vm2, %v96_v11, 0.0  ;;  %v107_v17 = vsel %vm85_vm4, %v105_v15, 0.0  ;;  %v108_v18 = vsel %vm86_vm5, %v106_v16, 0.0  ;;  %v186_v11 = vld [vmem:[#allocation5 + $0x68] sm:$0xff] }
  0xb0   :  { %109 = vrot.lane.b32.xlu0 %v98_v13, %s463_s23  ;;  %111 = vrot.lane.b32.xlu1 %v99_v14, %s463_s23  ;;  %v158_v52 = vmul.f32 %v156_v40, %v99_v14  ;;  %v157_v57 = vmul.f32 %v155_v45, %v98_v13  ;;  %v171_v7 = vmul.f32 %v169_v58, %v107_v17 }
  0xb1   :  { %v127_v19 = vpop.permute.xlu1 %126  ;;  %v125_v20 = vpop.permute.xlu0 %124  ;;  %v172_v8 = vmul.f32 %v170_v59, %v108_v18 }
  0xb2   :  { %v129_v21 = vsel %vm113_vm6, %v127_v19, %v125_v20  ;;  %v128_v27 = vsel %vm113_vm6, %v125_v20, %v127_v19 }
  0xb3   :  { %v130_v31 = vsel %vm87_vm7, %v129_v21, 0.0  ;;  %v136_v36 = vmul.f32 %v134_v26, %v128_v27 }
  0xb4   :  { %139 = vrot.lane.b32.xlu0 %v107_v17, %s463_s23  ;;  %141 = vrot.lane.b32.xlu1 %v108_v18, %s463_s23  ;;  %v135_v41 = vmul.f32 %v133_v30, %v130_v31 }
  0xb8   :  { %191 = vrot.lane.b32.xlu0 %v532_v0, %s468_s2  ;;  %193 = vrot.lane.b32.xlu1 %v536_v1, %s468_s2 }
  0xbc   :  { %175 = vrot.lane.b32.xlu0 %v98_v13, %s468_s2  ;;  %177 = vrot.lane.b32.xlu1 %v99_v14, %s468_s2  ;;  %v200_v13 = vld [vmem:[#allocation5 + $0x70] sm:$0xff]  ;;  %v201_v14 = vld [vmem:[#allocation5 + $0x78] sm:$0xff] }
  0xc0   :  { %206 = vrot.lane.b32.xlu0 %v107_v17, %s468_s2  ;;  %208 = vrot.lane.b32.xlu1 %v108_v18, %s468_s2  ;;  %v595_v18 = vshrl.u32 %v56_v2, 7 }
  0xc2   :  { %v255_v40 = vsub.s32 2, %v595_v18  ;;  %v286_v45 = vsub.s32 4, %v595_v18  ;;  %v314_v49 = vsub.s32 6, %v595_v18 }
 0x122   :  { %v112_v23 = vpop.permute.xlu1 %111  ;;  %v110_v25 = vpop.permute.xlu0 %109 }
 0x123   :  { %v114_v28 = vsel %vm113_vm6, %v110_v25, %v112_v23  ;;  %v115_v29 = vsel %vm113_vm6, %v112_v23, %v110_v25 }
 0x124   :  { %v116_v32 = vsel %vm87_vm7, %v115_v29, 0.0  ;;  %v121_v33 = vmul.f32 %v119_v22, %v114_v28  ;;  %v216_v28 = vld [vmem:[#allocation5 + $0x88] sm:$0xff] }
 0x125   :  { %v120_v34 = vmul.f32 %v118_v24, %v116_v32  ;;  %v215_v24 = vld [vmem:[#allocation5 + $0x80] sm:$0xff] }
 0x126   :  { %v142_v37 = vpop.permute.xlu1 %141  ;;  %v140_v39 = vpop.permute.xlu0 %139  ;;  %v138_v46 = vadd.f32 %v136_v36, %v121_v33 }
 0x127   :  { %v143_v43 = vsel %vm113_vm6, %v140_v39, %v142_v37  ;;  %v144_v44 = vsel %vm113_vm6, %v142_v37, %v140_v39  ;;  %v137_v50 = vadd.f32 %v135_v41, %v120_v34  ;;  %v240_v39 = vsub.s32 1, %v595_v18 }
 0x128   :  { %v145_v47 = vsel %vm87_vm7, %v144_v44, 0.0  ;;  %v151_v48 = vmul.f32 %v149_v35, %v143_v43  ;;  %v225_v35 = vsub.s32 0, %v595_v18  ;;  %v270_v41 = vsub.s32 3, %v595_v18  ;;  %v221_v44 = vld [vmem:[#allocation7] sm:$0xff] }
 0x129   :  { %v150_v51 = vmul.f32 %v148_v38, %v145_v47  ;;  %v251_v47 = vld [vmem:[#allocation7 + $0x20] sm:$0xff] }
 0x12a   :  { %v153_v54 = vadd.f32 %v151_v48, %v138_v46  ;;  %v194_v55 = vpop.permute.xlu1 %193  ;;  %v192_v56 = vpop.permute.xlu0 %191  ;;  %v237_v46 = vld [vmem:[#allocation7 + $0x18] sm:$0xff]  ;;  %v300_v48 = vsub.s32 5, %v595_v18 }
 0x12b   :  { %v152_v60 = vadd.f32 %v150_v51, %v137_v50  ;;  %v196_v63 = vsel %vm179_vm8, %v194_v55, %v192_v56  ;;  %v195_v9 = vsel %vm179_vm8, %v192_v56, %v194_v55  ;;  %v328_v50 = vsub.s32 7, %v595_v18  ;;  %v252_v55 = vld [vmem:[#allocation7 + $0x28] sm:$0xff]  ;;  %v266_v56 = vld [vmem:[#allocation7 + $0x30] sm:$0xff] }
 0x12c   :  { %v160_v62 = vadd.f32 %v158_v52, %v153_v54  ;;  %v198_v0 = vsel %vm90_vm9, %v196_v63, 0.0  ;;  %v202_v25 = vmul.f32 %v200_v13, %v195_v9 }
 0x12d   :  { %v159_v5 = vadd.f32 %v157_v57, %v152_v60  ;;  %v203_v26 = vmul.f32 %v201_v14, %v198_v0  ;;  %v267_v57 = vld [vmem:[#allocation7 + $0x38] sm:$0xff] }
 0x12e   :  { %v167_v1 = vadd.f32 %v165_v53, %v160_v62  ;;  %v178_v10 = vpop.permute.xlu1 %177  ;;  %v176_v12 = vpop.permute.xlu0 %175 }
 0x12f   :  { %v166_v15 = vadd.f32 %v164_v61, %v159_v5  ;;  %v180_v16 = vsel %vm179_vm8, %v176_v12, %v178_v10  ;;  %v181_v17 = vsel %vm179_vm8, %v178_v10, %v176_v12 }
 0x130   :  { %v174_v19 = vadd.f32 %v172_v8, %v167_v1  ;;  %v183_v20 = vsel %vm90_vm9, %v181_v17, 0.0  ;;  %v187_v21 = vmul.f32 %v185_v6, %v180_v16 }
 0x131   :  { %v173_v22 = vadd.f32 %v171_v7, %v166_v15  ;;  %v188_v23 = vmul.f32 %v186_v11, %v183_v20 }
 0x132   :  { %v209_v27 = vpop.permute.xlu1 %208  ;;  %v207_v29 = vpop.permute.xlu0 %206 }
 0x133   :  { %v189_v30 = vadd.f32 %v187_v21, %v173_v22  ;;  %v190_v31 = vadd.f32 %v188_v23, %v174_v19  ;;  %v210_v32 = vsel %vm179_vm8, %v207_v29, %v209_v27  ;;  %v211_v2 = vsel %vm179_vm8, %v209_v27, %v207_v29 }
 0x134   :  { %v213_v33 = vsel %vm90_vm9, %v211_v2, 0.0  ;;  %v217_v34 = vmul.f32 %v215_v24, %v210_v32 }
 0x135   :  { %v205_v36 = vadd.f32 %v203_v26, %v190_v31  ;;  %v204_v37 = vadd.f32 %v202_v25, %v189_v30  ;;  %v218_v38 = vmul.f32 %v216_v28, %v213_v33 }
 0x137   :  { %v219_v42 = vadd.f32 %v217_v34, %v204_v37  ;;  %v220_v43 = vadd.f32 %v218_v38, %v205_v36 }
 0x139   :  { %v226_v51 = vrot.slane %v219_v42, %v225_v35  ;;  %v230_v52 = vrot.slane %v220_v43, %v225_v35  ;;  %v241_v53 = vrot.slane %v219_v42, %v240_v39  ;;  %v245_v54 = vrot.slane %v220_v43, %v240_v39 }
 0x13a   :  { %v256_v58 = vrot.slane %v219_v42, %v255_v40  ;;  %v260_v59 = vrot.slane %v220_v43, %v255_v40  ;;  %v271_v60 = vrot.slane %v219_v42, %v270_v41  ;;  %v275_v61 = vrot.slane %v220_v43, %v270_v41 }
 0x13b   :  { %v231_v62 = vmul.f32 %v226_v51, %v221_v44  ;;  %v232_v63 = vmul.f32 %v230_v52, %v222_v3  ;;  %v246_v5 = vmul.f32 %v241_v53, %v236_v4  ;;  %v247_v6 = vmul.f32 %v245_v54, %v237_v46 }
 0x13c   :  { %v261_v7 = vmul.f32 %v256_v58, %v251_v47  ;;  %v262_v8 = vmul.f32 %v260_v59, %v252_v55  ;;  %v276_v1 = vmul.f32 %v271_v60, %v266_v56  ;;  %v277_v9 = vmul.f32 %v275_v61, %v267_v57 }
 0x13d   :  { %v248_v10 = vadd.f32 %v246_v5, %v231_v62  ;;  %v249_v11 = vadd.f32 %v247_v6, %v232_v63  ;;  %v287_v12 = vrot.slane %v219_v42, %v286_v45  ;;  %v291_v13 = vrot.slane %v220_v43, %v286_v45 }
 0x13e   :  { %v301_v14 = vrot.slane %v219_v42, %v300_v48  ;;  %v305_v0 = vrot.slane %v220_v43, %v300_v48  ;;  %v315_v15 = vrot.slane %v219_v42, %v314_v49  ;;  %v319_v16 = vrot.slane %v220_v43, %v314_v49 }
 0x13f   :  { %v263_v17 = vadd.f32 %v261_v7, %v248_v10  ;;  %v264_v18 = vadd.f32 %v262_v8, %v249_v11  ;;  %v292_v19 = vmul.f32 %v287_v12, %v221_v44  ;;  %v293_v20 = vmul.f32 %v291_v13, %v222_v3 }
 0x140   :  { %v306_v21 = vmul.f32 %v301_v14, %v236_v4  ;;  %v307_v22 = vmul.f32 %v305_v0, %v237_v46  ;;  %v329_v25 = vrot.slane %v219_v42, %v328_v50  ;;  %v333_v26 = vrot.slane %v220_v43, %v328_v50 }
 0x141   :  { %v278_v23 = vadd.f32 %v276_v1, %v263_v17  ;;  %v279_v24 = vadd.f32 %v277_v9, %v264_v18  ;;  %v320_v29 = vmul.f32 %v315_v15, %v251_v47  ;;  %v321_v30 = vmul.f32 %v319_v16, %v252_v55 }
 0x142   :  { %v308_v27 = vadd.f32 %v306_v21, %v292_v19  ;;  %v309_v28 = vadd.f32 %v307_v22, %v293_v20  ;;  %v334_v2 = vmul.f32 %v329_v25, %v266_v56  ;;  %v335_v33 = vmul.f32 %v333_v26, %v267_v57 }
 0x143   :  { %280 = vst [vmem:[#allocation8] sm:$0xff] %v278_v23  ;;  %281 = vst [vmem:[#allocation8 + $0x8] sm:$0xff] %v279_v24 }
 0x144   :  { %v322_v31 = vadd.f32 %v320_v29, %v308_v27  ;;  %v323_v32 = vadd.f32 %v321_v30, %v309_v28 }
 0x146   :  { %v336_v34 = vadd.f32 %v334_v2, %v322_v31  ;;  %v337_v35 = vadd.f32 %v335_v33, %v323_v32 }
 0x148   :  { %338 = vst [vmem:[#allocation8 + $0x10] sm:$0xff] %v336_v34  ;;  %339 = vst [vmem:[#allocation8 + $0x18] sm:$0xff] %v337_v35 }
 0x149   :  { %444 = shalt.err (!%p441_p0)
}
 0x14a   :  { %s445_s30 = scalar_lea.hbm %s631_s3, 512 }
 0x14b   :  { %p446_p1 = scmp.ne.s32.totalorder %s631_s3, %s445_s30  ;;  %p449_p2 = scmp.lt.u32.totalorder %s445_s30, %s631_s3 }
 0x14d   :  { %p451_p3 = pnand %p449_p2, %p446_p1 }
 0x14f   :  { %454 = shalt.err (!%p451_p3)
}
 0x150   :  { %351 = dma.vmem_to_hbm [thread:$0]  %s346_s26, 512, %s631_s3, [#allocation4], %s462_s22, %s462_s22, %s463_s23  }
 0x151   :  { %459 = dma.done.wait [#allocation4], 512  }
 0x152   :  { %460 = vsyncadd [#allocation4], 4294966784 }
 0x153   :  { %355 = vsyncpa [#allocation3], 1 }
 0x154   :  { %356 = vsyncpa [#allocation6], 1 }
 0x155   :  { %357 = vsyncpa [#allocation4], 1 }

</bundles_post_ra>
